<compile_context>
chip_gen: v6e
topology: v6e:2x2x1
jax: 0.10.0
libtpu: 0.0.40
codegen_flags: <defaults>
</compile_context>

<pallas_src>
import numpy as np
import jax
import jax.numpy as jnp
from jax.experimental import pallas as pl
from jax.experimental.pallas import tpu as pltpu

# ---- problem sizes (small, consistent with the module) ---------------------
B = 2             # batch
CIN = 8           # conv_in_channels
COUT = 8          # conv_out_channels
NUM_CLASSES = 10
H = W = 14        # AvgPool2d(5, stride=3): (14-5)//3 + 1 = 4  -> 4x4 spatial
PH = PW = 4       # pooled spatial
HID = 1024        # Linear hidden size
FLAT = PH * PW * COUT          # 128 features into the first Linear (C,H,W order)
BN_EPS = 1e-5

# padded sizes for MXU / lane alignment
BP = 8                          # batch padded to one sublane tile
K1 = CIN * H * W                # 1568
K1P = 1664                      # next multiple of 128
NCLS_P = 128                    # classifier dim padded to one lane tile


def _make_pool_matrix():
    """AvgPool2d(5, stride=3) on 14x14 expressed as a (196, 16) matrix."""
    P = np.zeros((H * W, PH * PW), dtype=np.float32)
    for oh in range(PH):
        for ow in range(PW):
            for kh in range(5):
                for kw in range(5):
                    P[(3 * oh + kh) * W + (3 * ow + kw), oh * PW + ow] = 1.0 / 25.0
    return jnp.asarray(P)


def aux_classifier_kernel(x_ref, wf_ref, bf_ref, w1_ref, b1_ref,
                          w2_ref, b2_ref, o_ref):
    # fused AvgPool + 1x1 conv + BN(eval):  (BP, K1P) @ (K1P, FLAT)
    z = jnp.dot(x_ref[...].astype(jnp.bfloat16), wf_ref[...],
                preferred_element_type=jnp.float32)
    z = jnp.maximum(z + bf_ref[...], 0.0)                    # (BP, FLAT) f32

    # Linear(128 -> 1024) + ReLU
    h = jnp.dot(z.astype(jnp.bfloat16), w1_ref[...],
                preferred_element_type=jnp.float32)
    h = jnp.maximum(h + b1_ref[...], 0.0)                    # (BP, HID) f32

    # Dropout(p=0.7) -> identity in eval mode.

    # Linear(1024 -> num_classes), classifier dim padded to 128 (lane-dense)
    o = jnp.dot(h.astype(jnp.bfloat16), w2_ref[...],
                preferred_element_type=jnp.float32) + b2_ref[...]
    o_ref[...] = o                                           # single full store


def aux_classifier(x_nchw, wc_raw, bc_raw, w1, b1, w2, b2):
    """x_nchw: (B, CIN, 14, 14) float32. Returns (B, NUM_CLASSES) float32."""
    # ---- wrapper-side parameter folding (all linear, done once) -------------
    bn_scale = 1.0 / np.sqrt(1.0 + BN_EPS)   # gamma=1, beta=0, mean=0, var=1
    P = _make_pool_matrix()                                   # (196, 16)
    # fused pool+conv+BN weight: [c*196+p, o*16+q] = wc[o,c]*P[p,q]*bn_scale
    wf = (jnp.einsum('oc,pq->cpoq', wc_raw.astype(jnp.float32), P)
          * bn_scale).reshape(K1, FLAT)
    bf = jnp.repeat(bc_raw.astype(jnp.float32) * bn_scale,
                    PH * PW).reshape(1, FLAT)                 # bias per (o, q)

    # ---- activation / weight shaping & padding (pure layout, no compute) ----
    x_flat = x_nchw.reshape(x_nchw.shape[0], K1).astype(jnp.float32)
    x_p = jnp.zeros((BP, K1P), jnp.float32).at[:x_nchw.shape[0], :K1].set(x_flat)
    wf_p = (jnp.zeros((K1P, FLAT), jnp.float32).at[:K1, :].set(wf)
            ).astype(jnp.bfloat16)

    w1_b = w1.astype(jnp.bfloat16)                            # (128, 1024)
    b1_r = b1.reshape(1, HID).astype(jnp.float32)

    w2_p = (jnp.zeros((HID, NCLS_P), jnp.float32)
            .at[:, :NUM_CLASSES].set(w2.astype(jnp.float32))
            ).astype(jnp.bfloat16)
    b2_p = (jnp.zeros((1, NCLS_P), jnp.float32)
            .at[:, :NUM_CLASSES].set(b2.reshape(1, -1).astype(jnp.float32)))

    vmem = pl.BlockSpec(memory_space=pltpu.MemorySpace.VMEM)
    out_p = pl.pallas_call(
        aux_classifier_kernel,
        out_shape=jax.ShapeDtypeStruct((BP, NCLS_P), jnp.float32),
        in_specs=[vmem] * 7,
        out_specs=vmem,
    )(x_p, wf_p, bf, w1_b, b1_r, w2_p, b2_p)

    # strip batch / class padding outside the kernel
    return out_p[:x_nchw.shape[0], :NUM_CLASSES]


def reference(x, wc_raw, bc_raw, w1, b1, w2, b2):
    """Pure-JAX replica of the PyTorch forward (eval mode)."""
    pooled = jnp.stack(
        [jnp.stack(
            [jnp.mean(x[:, :, 3 * i:3 * i + 5, 3 * j:3 * j + 5], axis=(2, 3))
             for j in range(PW)], axis=-1)
         for i in range(PH)], axis=-2)                        # (B, C, 4, 4)
    y = jnp.einsum('oc,bchw->bohw', wc_raw, pooled) + bc_raw[None, :, None, None]
    y = y / jnp.sqrt(1.0 + BN_EPS)                            # eval BatchNorm
    y = jnp.maximum(y, 0.0)
    flat = y.reshape(x.shape[0], -1)                          # NCHW flatten
    h = jnp.maximum(flat @ w1 + b1.reshape(1, -1), 0.0)
    return h @ w2 + b2.reshape(1, -1)


if __name__ == "__main__":
    key = jax.random.PRNGKey(0)
    kx, kwc, kw1, kb1, kw2, kb2 = jax.random.split(key, 6)

    x = jax.random.normal(kx, (B, CIN, H, W), dtype=jnp.float32)

    # Conv 1x1: xavier_normal_ weight, zero bias (as in ConvBlock.initializeConv)
    xavier_std = np.sqrt(2.0 / (CIN + COUT))
    wc_raw = jax.random.normal(kwc, (COUT, CIN), dtype=jnp.float32) * xavier_std
    bc_raw = jnp.zeros((COUT,), dtype=jnp.float32)

    # Linear layers (stored as (in_features, out_features))
    w1 = jax.random.normal(kw1, (FLAT, HID), dtype=jnp.float32) / np.sqrt(FLAT)
    b1 = jax.random.normal(kb1, (HID,), dtype=jnp.float32) * 0.01
    w2 = jax.random.normal(kw2, (HID, NUM_CLASSES), dtype=jnp.float32) / np.sqrt(HID)
    b2 = jax.random.normal(kb2, (NUM_CLASSES,), dtype=jnp.float32) * 0.01

    out = jax.block_until_ready(aux_classifier(x, wc_raw, bc_raw, w1, b1, w2, b2))
    ref = jax.block_until_ready(reference(x, wc_raw, bc_raw, w1, b1, w2, b2))

    if not np.allclose(np.asarray(out), np.asarray(ref), rtol=2e-2, atol=2e-2):
        raise AssertionError("Pallas kernel does not match JAX reference")

    print("KERNEL_OK")
</pallas_src>

<mosaic_0001>
module attributes {stable_mosaic.version = 11 : i64} {
  func.func @aux_classifier_kernel(%arg0: memref<8x1664xf32, #tpu.memory_space<vmem>>, %arg1: memref<1664x128xbf16, #tpu.memory_space<vmem>>, %arg2: memref<1x128xf32, #tpu.memory_space<vmem>>, %arg3: memref<128x1024xbf16, #tpu.memory_space<vmem>>, %arg4: memref<1x1024xf32, #tpu.memory_space<vmem>>, %arg5: memref<1024x128xbf16, #tpu.memory_space<vmem>>, %arg6: memref<1x128xf32, #tpu.memory_space<vmem>>, %arg7: memref<8x128xf32, #tpu.memory_space<vmem>>) attributes {dimension_semantics = [], scalar_prefetch = 0 : i64, scratch_operands = 0 : i64, tpu.core_type = #tpu.core_type<tc>} {
    %c0 = arith.constant 0 : index
    %c0_0 = arith.constant 0 : index
    %0 = vector.load %arg0[%c0, %c0_0] : memref<8x1664xf32, #tpu.memory_space<vmem>>, vector<8x1664xf32>
    %1 = arith.truncf %0 : vector<8x1664xf32> to vector<8x1664xbf16>
    %c0_1 = arith.constant 0 : index
    %c0_2 = arith.constant 0 : index
    %2 = vector.load %arg1[%c0_1, %c0_2] : memref<1664x128xbf16, #tpu.memory_space<vmem>>, vector<1664x128xbf16>
    %cst = arith.constant dense<0.000000e+00> : vector<8x128xf32>
    %3 = tpu.matmul %1, %2, %cst {dimension_numbers = #tpu.dot_dimension_numbers<[1], [0], [0], [1], [0, 0, 1, 1], [], []>} : vector<8x1664xbf16>, vector<1664x128xbf16>, vector<8x128xf32> -> vector<8x128xf32>
    %c0_3 = arith.constant 0 : index
    %c0_4 = arith.constant 0 : index
    %4 = vector.load %arg2[%c0_3, %c0_4] : memref<1x128xf32, #tpu.memory_space<vmem>>, vector<1x128xf32>
    %5 = vector.broadcast %4 : vector<1x128xf32> to vector<8x128xf32>
    %6 = arith.addf %3, %5 : vector<8x128xf32>
    %cst_5 = arith.constant 0.000000e+00 : f32
    %7 = vector.broadcast %cst_5 : f32 to vector<8x128xf32>
    %8 = arith.maximumf %6, %7 : vector<8x128xf32>
    %9 = arith.truncf %8 : vector<8x128xf32> to vector<8x128xbf16>
    %c0_6 = arith.constant 0 : index
    %c0_7 = arith.constant 0 : index
    %10 = vector.load %arg3[%c0_6, %c0_7] : memref<128x1024xbf16, #tpu.memory_space<vmem>>, vector<128x1024xbf16>
    %cst_8 = arith.constant dense<0.000000e+00> : vector<8x1024xf32>
    %11 = tpu.matmul %9, %10, %cst_8 {dimension_numbers = #tpu.dot_dimension_numbers<[1], [0], [0], [1], [0, 0, 1, 1], [], []>} : vector<8x128xbf16>, vector<128x1024xbf16>, vector<8x1024xf32> -> vector<8x1024xf32>
    %c0_9 = arith.constant 0 : index
    %c0_10 = arith.constant 0 : index
    %12 = vector.load %arg4[%c0_9, %c0_10] : memref<1x1024xf32, #tpu.memory_space<vmem>>, vector<1x1024xf32>
    %13 = vector.broadcast %12 : vector<1x1024xf32> to vector<8x1024xf32>
    %14 = arith.addf %11, %13 : vector<8x1024xf32>
    %cst_11 = arith.constant 0.000000e+00 : f32
    %15 = vector.broadcast %cst_11 : f32 to vector<8x1024xf32>
    %16 = arith.maximumf %14, %15 : vector<8x1024xf32>
    %17 = arith.truncf %16 : vector<8x1024xf32> to vector<8x1024xbf16>
    %c0_12 = arith.constant 0 : index
    %c0_13 = arith.constant 0 : index
    %18 = vector.load %arg5[%c0_12, %c0_13] : memref<1024x128xbf16, #tpu.memory_space<vmem>>, vector<1024x128xbf16>
    %cst_14 = arith.constant dense<0.000000e+00> : vector<8x128xf32>
    %19 = tpu.matmul %17, %18, %cst_14 {dimension_numbers = #tpu.dot_dimension_numbers<[1], [0], [0], [1], [0, 0, 1, 1], [], []>} : vector<8x1024xbf16>, vector<1024x128xbf16>, vector<8x128xf32> -> vector<8x128xf32>
    %c0_15 = arith.constant 0 : index
    %c0_16 = arith.constant 0 : index
    %20 = vector.load %arg6[%c0_15, %c0_16] : memref<1x128xf32, #tpu.memory_space<vmem>>, vector<1x128xf32>
    %21 = vector.broadcast %20 : vector<1x128xf32> to vector<8x128xf32>
    %22 = arith.addf %19, %21 : vector<8x128xf32>
    %c0_17 = arith.constant 0 : index
    %c0_18 = arith.constant 0 : index
    %23 = vector.load %arg7[%c0_17, %c0_18] : memref<8x128xf32, #tpu.memory_space<vmem>>, vector<8x128xf32>
    tpu.vector_store %arg7[%c0_17, %c0_18], %22 {strides = array<i32>} : memref<8x128xf32, #tpu.memory_space<vmem>>, vector<8x128xf32>,
    return
  }
}

</mosaic_0001>

<bundles_post_ra>
// kernel: tpu_custom_call.1
= control target key start
LH: loop header
LB: loop body
LE: loop exit
PB: predicated region body
PF: predicated region fallthrough
CT: control target
= control target key end

     0   :  { %12 = vsyncpa [#allocation3], 0  ;;  %s3469_s0 = inlined_call_operand.hbm [shape: f32[8,1664], index: 0, kind: input, shape index: {}]   ;;  %s3470_s1 = inlined_call_operand.hbm [shape: bf16[1664,128], index: 1, kind: input, shape index: {}]   ;;  %s3471_s2 = inlined_call_operand.vmem [shape: f32[1,128], index: 2, kind: input, shape index: {}]   ;;  %s3472_s3 = inlined_call_operand.hbm [shape: bf16[128,1024], index: 3, kind: input, shape index: {}]   ;;  %s3473_s4 = inlined_call_operand.hbm [shape: f32[1,1024], index: 4, kind: input, shape index: {}]   ;;  %s3474_s5 = inlined_call_operand.hbm [shape: bf16[1024,128], index: 5, kind: input, shape index: {}]   ;;  %s3475_s6 = inlined_call_operand.vmem [shape: f32[1,128], index: 6, kind: input, shape index: {}]   ;;  %s3476_s7 = inlined_call_operand.hbm [shape: f32[8,128], index: 7, kind: output, shape index: {}]  }
   0x1   :  { %13 = vsyncpa [#allocation6], 0 }
   0x2   :  { %14 = vsyncpa [#allocation9], 0 }
   0x3   :  { %15 = vsyncpa [#allocation4], 0  ;;  %s3334_s24 = smov [#allocation5]  }
   0x4   :  { %s31_s25 = sshll.u32 %s3334_s24, 4  ;;  %s32_s25 = int_to_ptr.vmem [resolvable:$true] %s31_s25 }
   0x5   :  { %s3214_s26 = scalar_lea.vmem %s32_s25, 13312  ;;  %p3219_p1 = scmp.lt.s32.totalorder %s32_s25, %s32_s25 }
   0x6   :  { %p3215_p0 = scmp.ne.s32.totalorder %s32_s25, %s3214_s26  ;;  %p3220_p2 = scmp.lt.s32.totalorder %s3214_s26, %s3214_s26 }
   0x8   :  { %p3221_p3 = por %p3220_p2, %p3219_p1 }
   0xa   :  { %p3222_p4 = pnand %p3221_p3, %p3215_p0 }
   0xc   :  { %3225 = shalt.err (!%p3222_p4)
}
   0xd   :  { %s3335_s27 = smov 64   ;;  %s3336_s28 = smov 4  }
   0xe   :  { %37 = dma.hbm_to_vmem [thread:$0]  %s3470_s1, 13312, %s32_s25, [#allocation6], %s3335_s27, %s3335_s27, %s3336_s28  }
   0xf   :  { %s3337_s8 = smov [#allocation8]   ;;  %s3338_s10 = smov [#allocation2]  }
  0x10   :  { %s58_s9 = sshll.u32 %s3337_s8, 4  ;;  %s22_s11 = sshll.u32 %s3338_s10, 4  ;;  %s59_s9 = int_to_ptr.vmem [resolvable:$true] %s58_s9  ;;  %s23_s11 = int_to_ptr.vmem [resolvable:$true] %s22_s11 }
  0x11   :  { %s3234_s12 = scalar_lea.vmem %s59_s9, 128  ;;  %p3239_p6 = scmp.lt.s32.totalorder %s59_s9, %s59_s9 }
  0x12   :  { %p3235_p5 = scmp.ne.s32.totalorder %s59_s9, %s3234_s12  ;;  %p3240_p7 = scmp.lt.s32.totalorder %s3234_s12, %s3234_s12 }
  0x14   :  { %p3241_p8 = por %p3240_p7, %p3239_p6 }
  0x16   :  { %p3242_p9 = pnand %p3241_p8, %p3235_p5 }
  0x18   :  { %3245 = shalt.err (!%p3242_p9)
}
  0x19   :  { %61 = dma.hbm_to_vmem [thread:$0]  %s3473_s4, 128, %s59_s9, [#allocation9]  }
  0x1a   :  { %s3254_s15 = scalar_lea.vmem %s23_s11, 1664  ;;  %p3259_p11 = scmp.lt.s32.totalorder %s23_s11, %s23_s11 }
  0x1b   :  { %p3255_p10 = scmp.ne.s32.totalorder %s23_s11, %s3254_s15  ;;  %p3260_p12 = scmp.lt.s32.totalorder %s3254_s15, %s3254_s15 }
  0x1d   :  { %p3261_p13 = por %p3260_p12, %p3259_p11 }
  0x1f   :  { %p3262_p0 = pnand %p3261_p13, %p3255_p10 }
  0x21   :  { %3265 = shalt.err (!%p3262_p0)
}
  0x22   :  { %25 = dma.hbm_to_vmem [thread:$0]  %s3469_s0, 1664, %s23_s11, [#allocation3]  }
  0x23   :  { %s3339_s17 = smov [#allocation7]  }
  0x24   :  { %s45_s18 = sshll.u32 %s3339_s17, 4  ;;  %s46_s18 = int_to_ptr.vmem [resolvable:$true] %s45_s18 }
  0x25   :  { %s3274_s19 = scalar_lea.vmem %s46_s18, 8192  ;;  %p3279_p2 = scmp.lt.s32.totalorder %s46_s18, %s46_s18 }
  0x26   :  { %p3275_p1 = scmp.ne.s32.totalorder %s46_s18, %s3274_s19  ;;  %p3280_p3 = scmp.lt.s32.totalorder %s3274_s19, %s3274_s19 }
  0x28   :  { %p3281_p4 = por %p3280_p3, %p3279_p2 }
  0x2a   :  { %p3282_p5 = pnand %p3281_p4, %p3275_p1 }
  0x2c   :  { %3285 = shalt.err (!%p3282_p5)
}
  0x2d   :  { %s3340_s4 = smov 512   ;;  %s3341_s20 = smov 32  }
  0x2e   :  { %51 = dma.hbm_to_vmem [thread:$0]  %s3472_s3, 8192, %s46_s18, [#allocation6], %s3340_s4, %s3340_s4, %s3341_s20  }
  0x2f   :  { %s3342_s23 = smov [#allocation10]  }
  0x30   :  { %s67_s24 = sshll.u32 %s3342_s23, 4  ;;  %s68_s24 = int_to_ptr.vmem [resolvable:$true] %s67_s24 }
  0x31   :  { %s3294_s0 = scalar_lea.vmem %s68_s24, 8192  ;;  %p3299_p7 = scmp.lt.s32.totalorder %s68_s24, %s68_s24 }
  0x32   :  { %p3295_p6 = scmp.ne.s32.totalorder %s68_s24, %s3294_s0  ;;  %p3300_p8 = scmp.lt.s32.totalorder %s3294_s0, %s3294_s0 }
  0x34   :  { %p3301_p9 = por %p3300_p8, %p3299_p7 }
  0x36   :  { %p3302_p10 = pnand %p3301_p9, %p3295_p6 }
  0x38   :  { %3305 = shalt.err (!%p3302_p10)
}
  0x39   :  { %73 = dma.hbm_to_vmem [thread:$0]  %s3474_s5, 8192, %s68_s24, [#allocation9], %s3335_s27, %s3335_s27, %s3336_s28  }
  0x3a   :  { %3326 = dma.done.wait [#allocation3], 1664  }
  0x3b   :  { %3327 = vsyncadd [#allocation3], 4294965632 }
  0x3c   :  { %3328 = dma.done.wait [#allocation6], 21504  }
  0x3d   :  { %3329 = vsyncadd [#allocation6], 4294945792 }
  0x3e   :  { %3330 = dma.done.wait [#allocation9], 8320  }
  0x3f   :  { %3331 = vsyncadd [#allocation9], 4294958976  ;;  %v3038_v0 = vld [vmem:[#allocation5 + $0x78] sm:$0xff]   ;;  %v3042_v4 = vld [vmem:[#allocation5 + $0x70] sm:$0xff]   ;;  %vm3344_vm0 = vmmov 0   ;;  %s3346_s28 = smov [#allocation11]  }
  0x40   :  { %v3039_v1 = vld [vmem:[#allocation5 + $0x38] sm:$0xff]   ;;  %2776 = vmatprep.subr.bf16.mxu0 %v3038_v0  ;;  %v3043_v5 = vld [vmem:[#allocation5 + $0x30] sm:$0xff]   ;;  %v3046_v8 = vld [vmem:[#allocation5 + $0x68] sm:$0xff]   ;;  %s2531_s29 = sshll.u32 %s3346_s28, 4  ;;  %s2532_s29 = int_to_ptr.vmem [resolvable:$true] %s2531_s29 }
  0x41   :  { %v3040_v2 = vld [vmem:[#allocation5 + $0xf8] sm:$0xff]   ;;  %2777 = vmatpush3.bf16.msra.mxu0 %v3039_v1  ;;  %v3044_v6 = vld [vmem:[#allocation5 + $0xf0] sm:$0xff]   ;;  %v3047_v9 = vld [vmem:[#allocation5 + $0x28] sm:$0xff]   ;;  %p3311_p12 = scmp.lt.s32.totalorder %s2532_s29, %s2532_s29 }
  0x42   :  { %v3041_v3 = vld [vmem:[#allocation5 + $0xb8] sm:$0xff]   ;;  %2798 = vmatprep.subr.bf16.mxu1 %v3040_v2  ;;  %2778 = vmatprep.subr.bf16.mxu0 %v3042_v4  ;;  %v3045_v7 = vld [vmem:[#allocation5 + $0xb0] sm:$0xff]   ;;  %v3048_v10 = vld [vmem:[#allocation5 + $0xe8] sm:$0xff]  }
  0x43   :  { %2799 = vmatpush3.bf16.msra.mxu1 %v3041_v3  ;;  %v3049_v11 = vld [vmem:[#allocation5 + $0xa8] sm:$0xff]   ;;  %v3050_v12 = vld [vmem:[#allocation5 + $0x60] sm:$0xff]   ;;  %v3054_v16 = vld [vmem:[#allocation5 + $0x58] sm:$0xff]  }
  0x44   :  { %2800 = vmatprep.subr.bf16.mxu1 %v3044_v6  ;;  %v3051_v13 = vld [vmem:[#allocation5 + $0x20] sm:$0xff]   ;;  %v3055_v17 = vld [vmem:[#allocation5 + $0x18] sm:$0xff]   ;;  %v3058_v20 = vld [vmem:[#allocation5 + $0x50] sm:$0xff]  }
  0x45   :  { %2779 = vmatpush3.bf16.msra.mxu0 %v3043_v5  ;;  %v3052_v14 = vld [vmem:[#allocation5 + $0xe0] sm:$0xff]   ;;  %v3056_v18 = vld [vmem:[#allocation5 + $0xd8] sm:$0xff]   ;;  %v3059_v21 = vld [vmem:[#allocation5 + $0x10] sm:$0xff]  }
  0x46   :  { %2780 = vmatprep.subr.bf16.mxu0 %v3046_v8  ;;  %v3053_v15 = vld [vmem:[#allocation5 + $0xa0] sm:$0xff]   ;;  %v3057_v19 = vld [vmem:[#allocation5 + $0x98] sm:$0xff]   ;;  %v3060_v22 = vld [vmem:[#allocation5 + $0xd0] sm:$0xff]  }
  0x47   :  { %2801 = vmatpush3.bf16.msra.mxu1 %v3045_v7  ;;  %v3061_v23 = vld [vmem:[#allocation5 + $0x90] sm:$0xff]   ;;  %v3062_v24 = vld [vmem:[#allocation5 + $0x48] sm:$0xff]   ;;  %v3066_v28 = vld [vmem:[#allocation5 + $0x40] sm:$0xff]  }
  0x48   :  { %2802 = vmatprep.subr.bf16.mxu1 %v3048_v10  ;;  %v3063_v25 = vld [vmem:[#allocation5 + $0x8] sm:$0xff]   ;;  %v3067_v29 = vld [vmem:[#allocation5] sm:$0xff]   ;;  %v92_v34 = vld [vmem:[#allocation2] sm:$0xff] }
  0x49   :  { %2781 = vmatpush3.bf16.msra.mxu0 %v3047_v9  ;;  %v3064_v26 = vld [vmem:[#allocation5 + $0xc8] sm:$0xff]   ;;  %v3068_v30 = vld [vmem:[#allocation5 + $0xc0] sm:$0xff]   ;;  %v105_v35 = vpack.c.bf16 %v92_v34, %v92_v34  ;;  %v3070_v36 = vld [vmem:[#allocation5 + $0x178] sm:$0xff]  }
  0x4a   :  { %2782 = vmatprep.subr.bf16.mxu0 %v3050_v12  ;;  %v3065_v27 = vld [vmem:[#allocation5 + $0x88] sm:$0xff]   ;;  %v93_v31 = vld [vmem:[#allocation2 + $0x8] sm:$0xff]  ;;  %v95_v37 = vld [vmem:[#allocation2 + $0x18] sm:$0xff] }
  0x4b   :  { %2803 = vmatpush3.bf16.msra.mxu1 %v3049_v11  ;;  %v106_v32 = vpack.c.bf16 %v93_v31, %v93_v31  ;;  %v3069_v33 = vld [vmem:[#allocation5 + $0x80] sm:$0xff]   ;;  %v108_v38 = vpack.c.bf16 %v95_v37, %v95_v37  ;;  %v3071_v39 = vld [vmem:[#allocation5 + $0x138] sm:$0xff]   ;;  %v94_v40 = vld [vmem:[#allocation2 + $0x10] sm:$0xff] }
  0x4c   :  { %2804 = vmatprep.subr.bf16.mxu1 %v3052_v14  ;;  %v107_v41 = vpack.c.bf16 %v94_v40, %v94_v40  ;;  %v3072_v42 = vld [vmem:[#allocation5 + $0x1f8] sm:$0xff]   ;;  %v3074_v44 = vld [vmem:[#allocation5 + $0x170] sm:$0xff]   ;;  %v3078_v48 = vld [vmem:[#allocation5 + $0x168] sm:$0xff]  }
  0x4d   :  { %2783 = vmatpush3.bf16.msra.mxu0 %v3051_v13  ;;  %989 = vmatprep.mubr.bf16.mxu0 %v106_v32  ;;  %v3073_v43 = vld [vmem:[#allocation5 + $0x1b8] sm:$0xff]   ;;  %v3075_v45 = vld [vmem:[#allocation5 + $0x130] sm:$0xff]   ;;  %v3079_v49 = vld [vmem:[#allocation5 + $0x128] sm:$0xff]  }
  0x4e   :  { %2784 = vmatprep.subr.bf16.mxu0 %v3054_v16  ;;  %1029 = vmatprep.mubr.bf16.mxu1 %v108_v38  ;;  %v3076_v46 = vld [vmem:[#allocation5 + $0x1f0] sm:$0xff]   ;;  %v3080_v50 = vld [vmem:[#allocation5 + $0x1e8] sm:$0xff]   ;;  %v3082_v52 = vld [vmem:[#allocation5 + $0x160] sm:$0xff]  }
  0x4f   :  { %2805 = vmatpush3.bf16.msra.mxu1 %v3053_v15  ;;  %v3077_v47 = vld [vmem:[#allocation5 + $0x1b0] sm:$0xff]   ;;  %v3081_v51 = vld [vmem:[#allocation5 + $0x1a8] sm:$0xff]   ;;  %v3083_v53 = vld [vmem:[#allocation5 + $0x120] sm:$0xff]  }
  0x50   :  { %2806 = vmatprep.subr.bf16.mxu1 %v3056_v18  ;;  %v3084_v54 = vld [vmem:[#allocation5 + $0x1e0] sm:$0xff]   ;;  %v3086_v56 = vld [vmem:[#allocation5 + $0x158] sm:$0xff]   ;;  %v3090_v60 = vld [vmem:[#allocation5 + $0x150] sm:$0xff]  }
  0x51   :  { %2785 = vmatpush3.bf16.msra.mxu0 %v3055_v17  ;;  %v3085_v55 = vld [vmem:[#allocation5 + $0x1a0] sm:$0xff]   ;;  %v3087_v57 = vld [vmem:[#allocation5 + $0x118] sm:$0xff]   ;;  %v3091_v61 = vld [vmem:[#allocation5 + $0x110] sm:$0xff]  }
  0x52   :  { %2786 = vmatprep.subr.bf16.mxu0 %v3058_v20  ;;  %v3088_v58 = vld [vmem:[#allocation5 + $0x1d8] sm:$0xff]   ;;  %v3092_v62 = vld [vmem:[#allocation5 + $0x1d0] sm:$0xff]   ;;  %v3094_v0 = vld [vmem:[#allocation5 + $0x148] sm:$0xff]  }
  0x53   :  { %2807 = vmatpush3.bf16.msra.mxu1 %v3057_v19  ;;  %v3089_v59 = vld [vmem:[#allocation5 + $0x198] sm:$0xff]   ;;  %v3093_v63 = vld [vmem:[#allocation5 + $0x190] sm:$0xff]   ;;  %v3095_v1 = vld [vmem:[#allocation5 + $0x108] sm:$0xff]  }
  0x54   :  { %2808 = vmatprep.subr.bf16.mxu1 %v3060_v22  ;;  %v3096_v2 = vld [vmem:[#allocation5 + $0x1c8] sm:$0xff]   ;;  %v3098_v4 = vld [vmem:[#allocation5 + $0x140] sm:$0xff]   ;;  %v96_v10 = vld [vmem:[#allocation2 + $0x20] sm:$0xff] }
  0x55   :  { %2787 = vmatpush3.bf16.msra.mxu0 %v3059_v21  ;;  %v3097_v3 = vld [vmem:[#allocation5 + $0x188] sm:$0xff]   ;;  %v3099_v5 = vld [vmem:[#allocation5 + $0x100] sm:$0xff]   ;;  %v109_v11 = vpack.c.bf16 %v96_v10, %v96_v10  ;;  %v3102_v12 = vld [vmem:[#allocation5 + $0x278] sm:$0xff]  }
  0x56   :  { %2788 = vmatprep.subr.bf16.mxu0 %v3062_v24  ;;  %v3100_v6 = vld [vmem:[#allocation5 + $0x1c0] sm:$0xff]   ;;  %v99_v13 = vld [vmem:[#allocation2 + $0x38] sm:$0xff]  ;;  %v3103_v15 = vld [vmem:[#allocation5 + $0x238] sm:$0xff]  }
  0x57   :  { %2809 = vmatpush3.bf16.msra.mxu1 %v3061_v23  ;;  %v97_v7 = vld [vmem:[#allocation2 + $0x28] sm:$0xff]  ;;  %v112_v14 = vpack.c.bf16 %v99_v13, %v99_v13  ;;  %v98_v16 = vld [vmem:[#allocation2 + $0x30] sm:$0xff]  ;;  %v3104_v18 = vld [vmem:[#allocation5 + $0x2f8] sm:$0xff]  }
  0x58   :  { %2810 = vmatprep.subr.bf16.mxu1 %v3064_v26  ;;  %v110_v8 = vpack.c.bf16 %v97_v7, %v97_v7  ;;  %v3101_v9 = vld [vmem:[#allocation5 + $0x180] sm:$0xff]   ;;  %v111_v17 = vpack.c.bf16 %v98_v16, %v98_v16  ;;  %v3105_v19 = vld [vmem:[#allocation5 + $0x2b8] sm:$0xff]   ;;  %v3106_v20 = vld [vmem:[#allocation5 + $0x270] sm:$0xff]  }
  0x59   :  { %2789 = vmatpush3.bf16.msra.mxu0 %v3063_v25  ;;  %v3107_v21 = vld [vmem:[#allocation5 + $0x230] sm:$0xff]   ;;  %v3110_v24 = vld [vmem:[#allocation5 + $0x268] sm:$0xff]   ;;  %v3117_v31 = vld [vmem:[#allocation5 + $0x2a0] sm:$0xff]  }
  0x5a   :  { %2790 = vmatprep.subr.bf16.mxu0 %v3066_v28  ;;  %v3108_v22 = vld [vmem:[#allocation5 + $0x2f0] sm:$0xff]   ;;  %v3111_v25 = vld [vmem:[#allocation5 + $0x228] sm:$0xff]   ;;  %v3114_v28 = vld [vmem:[#allocation5 + $0x260] sm:$0xff]  }
  0x5b   :  { %2811 = vmatpush3.bf16.msra.mxu1 %v3065_v27  ;;  %v3109_v23 = vld [vmem:[#allocation5 + $0x2b0] sm:$0xff]   ;;  %v3112_v26 = vld [vmem:[#allocation5 + $0x2e8] sm:$0xff]   ;;  %v3118_v32 = vld [vmem:[#allocation5 + $0x258] sm:$0xff]  }
  0x5c   :  { %2812 = vmatprep.subr.bf16.mxu1 %v3068_v30  ;;  %v3113_v27 = vld [vmem:[#allocation5 + $0x2a8] sm:$0xff]   ;;  %v3116_v30 = vld [vmem:[#allocation5 + $0x2e0] sm:$0xff]   ;;  %v3120_v34 = vld [vmem:[#allocation5 + $0x2d8] sm:$0xff]  }
  0x5d   :  { %2791 = vmatpush3.bf16.msra.mxu0 %v3067_v29  ;;  %v3115_v29 = vld [vmem:[#allocation5 + $0x220] sm:$0xff]   ;;  %v3123_v37 = vld [vmem:[#allocation5 + $0x210] sm:$0xff]   ;;  %v3126_v40 = vld [vmem:[#allocation5 + $0x248] sm:$0xff]  }
  0x5e   :  { %2820 = vmatprep.subr.bf16.mxu0 %v3070_v36  ;;  %v3122_v36 = vld [vmem:[#allocation5 + $0x250] sm:$0xff]   ;;  %v1300_v7 = vld [vmem:[#allocation7 + $0x1e8] sm:$0xff] }
  0x5f   :  { %2813 = vmatpush3.bf16.msra.mxu1 %v3069_v33  ;;  %v3119_v33 = vld [vmem:[#allocation5 + $0x218] sm:$0xff]   ;;  %v3124_v38 = vld [vmem:[#allocation5 + $0x2d0] sm:$0xff]   ;;  %v1288_v13 = vld [vmem:[#allocation7 + $0x188] sm:$0xff] }
  0x60   :  { %990 = vmatmul.mubr.bf16.vlgmr.msra.gmra.mxu0 %v105_v35  ;;  %2842 = vmatprep.subr.bf16.mxu1 %v3072_v42  ;;  %v3121_v35 = vld [vmem:[#allocation5 + $0x298] sm:$0xff]   ;;  %v3128_v42 = vld [vmem:[#allocation5 + $0x2c8] sm:$0xff]  }
  0x61   :  { %2821 = vmatpush3.bf16.msra.mxu0 %v3071_v39  ;;  %1069 = vmatprep.mubr.bf16.mxu0 %v110_v8  ;;  %v3125_v39 = vld [vmem:[#allocation5 + $0x290] sm:$0xff]   ;;  %v1292_v16 = vld [vmem:[#allocation7 + $0x1a8] sm:$0xff] }
  0x62   :  { %1030 = vmatmul.mubr.bf16.vlgmr.msra.gmra.mxu1 %v107_v41  ;;  %2822 = vmatprep.subr.bf16.mxu0 %v3074_v44  ;;  %v3127_v41 = vld [vmem:[#allocation5 + $0x208] sm:$0xff]   ;;  %v3130_v44 = vld [vmem:[#allocation5 + $0x240] sm:$0xff]  }
  0x63   :  { %2843 = vmatpush3.bf16.msra.mxu1 %v3073_v43  ;;  %1109 = vmatprep.mubr.bf16.mxu1 %v112_v14  ;;  %v3129_v43 = vld [vmem:[#allocation5 + $0x288] sm:$0xff]  }
  0x64   :  { %2844 = vmatprep.subr.bf16.mxu1 %v3076_v46  ;;  %v3132_v46 = vld [vmem:[#allocation5 + $0x2c0] sm:$0xff]  }
  0x65   :  { %2823 = vmatpush3.bf16.msra.mxu0 %v3075_v45  ;;  %v3131_v45 = vld [vmem:[#allocation5 + $0x200] sm:$0xff]  }
  0x66   :  { %2824 = vmatprep.subr.bf16.mxu0 %v3078_v48 }
  0x67   :  { %2845 = vmatpush3.bf16.msra.mxu1 %v3077_v47  ;;  %v101_v47 = vld [vmem:[#allocation2 + $0x48] sm:$0xff] }
  0x68   :  { %2846 = vmatprep.subr.bf16.mxu1 %v3080_v50  ;;  %v114_v48 = vpack.c.bf16 %v101_v47, %v101_v47  ;;  %v100_v50 = vld [vmem:[#allocation2 + $0x40] sm:$0xff] }
  0x69   :  { %2825 = vmatpush3.bf16.msra.mxu0 %v3079_v49  ;;  %v3133_v49 = vld [vmem:[#allocation5 + $0x280] sm:$0xff]  }
  0x6a   :  { %2826 = vmatprep.subr.bf16.mxu0 %v3082_v52  ;;  %v103_v52 = vld [vmem:[#allocation2 + $0x58] sm:$0xff] }
  0x6b   :  { %2847 = vmatpush3.bf16.msra.mxu1 %v3081_v51  ;;  %v3343_v51 = vmov 0.0  }
  0x6c   :  { %2848 = vmatprep.subr.bf16.mxu1 %v3084_v54  ;;  %v116_v54 = vpack.c.bf16 %v103_v52, %v103_v52  ;;  %v1252_v52 = vld [vmem:[#allocation7 + $0x68] sm:$0xff] }
  0x6d   :  { %2827 = vmatpush3.bf16.msra.mxu0 %v3083_v53  ;;  %v113_v53 = vpack.c.bf16 %v100_v50, %v100_v50  ;;  %v1251_v50 = vld [vmem:[#allocation7 + $0x60] sm:$0xff] }
  0x6e   :  { %2828 = vmatprep.subr.bf16.mxu0 %v3086_v56  ;;  %v102_v56 = vld [vmem:[#allocation2 + $0x50] sm:$0xff] }
  0x6f   :  { %2849 = vmatpush3.bf16.msra.mxu1 %v3085_v55  ;;  %v3134_v55 = vld [vmem:[#allocation5 + $0x338] sm:$0xff]  }
  0x70   :  { %2850 = vmatprep.subr.bf16.mxu1 %v3088_v58  ;;  %v3135_v58 = vld [vmem:[#allocation5 + $0x330] sm:$0xff]  }
  0x71   :  { %2829 = vmatpush3.bf16.msra.mxu0 %v3087_v57  ;;  %v115_v57 = vpack.c.bf16 %v102_v56, %v102_v56 }
  0x72   :  { %2830 = vmatprep.subr.bf16.mxu0 %v3090_v60  ;;  %v3137_v60 = vld [vmem:[#allocation5 + $0x320] sm:$0xff]  }
  0x73   :  { %2851 = vmatpush3.bf16.msra.mxu1 %v3089_v59  ;;  %v3136_v59 = vld [vmem:[#allocation5 + $0x328] sm:$0xff]  }
  0x74   :  { %2852 = vmatprep.subr.bf16.mxu1 %v3092_v62  ;;  %v3139_v62 = vld [vmem:[#allocation5 + $0x310] sm:$0xff]  }
  0x75   :  { %2831 = vmatpush3.bf16.msra.mxu0 %v3091_v61  ;;  %v3138_v61 = vld [vmem:[#allocation5 + $0x318] sm:$0xff]  }
  0x76   :  { %2832 = vmatprep.subr.bf16.mxu0 %v3094_v0  ;;  %v3141_v0 = vld [vmem:[#allocation5 + $0x300] sm:$0xff]  }
  0x77   :  { %2853 = vmatpush3.bf16.msra.mxu1 %v3093_v63  ;;  %v3140_v63 = vld [vmem:[#allocation5 + $0x308] sm:$0xff]  }
  0x78   :  { %2854 = vmatprep.subr.bf16.mxu1 %v3096_v2 }
  0x79   :  { %2833 = vmatpush3.bf16.msra.mxu0 %v3095_v1  ;;  %v104_v1 = vld [vmem:[#allocation2 + $0x60] sm:$0xff] }
  0x7a   :  { %2834 = vmatprep.subr.bf16.mxu0 %v3098_v4  ;;  %v117_v2 = vpack.c.bf16 %v104_v1, %v104_v1  ;;  %v1299_v4 = vld [vmem:[#allocation7 + $0x1e0] sm:$0xff] }
  0x7b   :  { %2855 = vmatpush3.bf16.msra.mxu1 %v3097_v3  ;;  %v1295_v3 = vld [vmem:[#allocation7 + $0x1c0] sm:$0xff] }
  0x7c   :  { %2856 = vmatprep.subr.bf16.mxu1 %v3100_v6  ;;  %v2704_v6 = vcombine.high %v1295_v3, %v1299_v4  ;;  %v2703_v8 = vcombine.low %v1295_v3, %v1299_v4  ;;  %v3408_v3 = vld [vmem:[#allocation7 + $0x1d0] sm:$0xff] }
  0x7d   :  { %2835 = vmatpush3.bf16.msra.mxu0 %v3099_v5  ;;  %v1296_v5 = vld [vmem:[#allocation7 + $0x1c8] sm:$0xff]  ;;  %v3410_v4 = vld [vmem:[#allocation7 + $0x1f0] sm:$0xff] }
  0x7e   :  { %2864 = vmatprep.subr.bf16.mxu0 %v3102_v12  ;;  %v2706_v10 = vcombine.high %v1296_v5, %v1300_v7  ;;  %v1291_v12 = vld [vmem:[#allocation7 + $0x1a0] sm:$0xff] }
  0x7f   :  { %2857 = vmatpush3.bf16.msra.mxu1 %v3101_v9  ;;  %v2705_v9 = vcombine.low %v1296_v5, %v1300_v7  ;;  %v3412_v5 = vld [vmem:[#allocation7 + $0x1d8] sm:$0xff] }
  0x80   :  { %1070 = vmatmul.mubr.bf16.vlgmr.msra.gmra.mxu0 %v109_v11  ;;  %2886 = vmatprep.subr.bf16.mxu1 %v3104_v18  ;;  %v1287_v11 = vld [vmem:[#allocation7 + $0x180] sm:$0xff]  ;;  %v3416_v7 = vld [vmem:[#allocation7 + $0x1f8] sm:$0xff] }
  0x81   :  { %2865 = vmatpush3.bf16.msra.mxu0 %v3103_v15  ;;  %1149 = vmatprep.mubr.bf16.mxu0 %v114_v48  ;;  %v2695_v14 = vcombine.low %v1287_v11, %v1291_v12  ;;  %v2696_v15 = vcombine.high %v1287_v11, %v1291_v12  ;;  %v1283_v18 = vld [vmem:[#allocation7 + $0x160] sm:$0xff]  ;;  %v3345_v11 = vmov 0  }
  0x82   :  { %1110 = vmatmul.mubr.bf16.vlgmr.msra.gmra.mxu1 %v111_v17  ;;  %2866 = vmatprep.subr.bf16.mxu0 %v3106_v20  ;;  %v1279_v17 = vld [vmem:[#allocation7 + $0x140] sm:$0xff]  ;;  %v2698_v20 = vcombine.high %v1288_v13, %v1292_v16 }
  0x83   :  { %2887 = vmatpush3.bf16.msra.mxu1 %v3105_v19  ;;  %1189 = vmatprep.mubr.bf16.mxu1 %v116_v54  ;;  %v2697_v19 = vcombine.low %v1288_v13, %v1292_v16  ;;  %v2542_v13 = vld [vmem:[%s3471_s2] ss:$0 sm:$0xff] }
  0x84   :  { %2888 = vmatprep.subr.bf16.mxu1 %v3108_v22  ;;  %v1280_v22 = vld [vmem:[#allocation7 + $0x148] sm:$0xff] }
  0x85   :  { %2867 = vmatpush3.bf16.msra.mxu0 %v3107_v21  ;;  %v2688_v21 = vcombine.high %v1279_v17, %v1283_v18 }
  0x86   :  { %2868 = vmatprep.subr.bf16.mxu0 %v3110_v24 }
  0x87   :  { %2889 = vmatpush3.bf16.msra.mxu1 %v3109_v23  ;;  %v1284_v23 = vld [vmem:[#allocation7 + $0x168] sm:$0xff] }
  0x88   :  { %2890 = vmatprep.subr.bf16.mxu1 %v3112_v26  ;;  %v2690_v24 = vcombine.high %v1280_v22, %v1284_v23  ;;  %v1275_v26 = vld [vmem:[#allocation7 + $0x120] sm:$0xff] }
  0x89   :  { %2869 = vmatpush3.bf16.msra.mxu0 %v3111_v25  ;;  %v1271_v25 = vld [vmem:[#allocation7 + $0x100] sm:$0xff] }
  0x8a   :  { %2870 = vmatprep.subr.bf16.mxu0 %v3114_v28  ;;  %v1276_v28 = vld [vmem:[#allocation7 + $0x128] sm:$0xff] }
  0x8b   :  { %2891 = vmatpush3.bf16.msra.mxu1 %v3113_v27  ;;  %v1272_v27 = vld [vmem:[#allocation7 + $0x108] sm:$0xff] }
  0x8c   :  { %2892 = vmatprep.subr.bf16.mxu1 %v3116_v30  ;;  %v2689_v30 = vcombine.low %v1280_v22, %v1284_v23 }
  0x8d   :  { %2871 = vmatpush3.bf16.msra.mxu0 %v3115_v29  ;;  %v2687_v29 = vcombine.low %v1279_v17, %v1283_v18 }
  0x8e   :  { %2872 = vmatprep.subr.bf16.mxu0 %v3118_v32  ;;  %v2682_v32 = vcombine.high %v1272_v27, %v1276_v28 }
  0x8f   :  { %2893 = vmatpush3.bf16.msra.mxu1 %v3117_v31  ;;  %v2680_v31 = vcombine.high %v1271_v25, %v1275_v26 }
  0x90   :  { %2894 = vmatprep.subr.bf16.mxu1 %v3120_v34  ;;  %v1267_v34 = vld [vmem:[#allocation7 + $0xe0] sm:$0xff] }
  0x91   :  { %2873 = vmatpush3.bf16.msra.mxu0 %v3119_v33  ;;  %v1263_v33 = vld [vmem:[#allocation7 + $0xc0] sm:$0xff] }
  0x92   :  { %2874 = vmatprep.subr.bf16.mxu0 %v3122_v36  ;;  %v1268_v36 = vld [vmem:[#allocation7 + $0xe8] sm:$0xff] }
  0x93   :  { %2895 = vmatpush3.bf16.msra.mxu1 %v3121_v35  ;;  %v1264_v35 = vld [vmem:[#allocation7 + $0xc8] sm:$0xff] }
  0x94   :  { %2896 = vmatprep.subr.bf16.mxu1 %v3124_v38  ;;  %v2681_v38 = vcombine.low %v1272_v27, %v1276_v28 }
  0x95   :  { %2875 = vmatpush3.bf16.msra.mxu0 %v3123_v37  ;;  %v2679_v37 = vcombine.low %v1271_v25, %v1275_v26 }
  0x96   :  { %2876 = vmatprep.subr.bf16.mxu0 %v3126_v40  ;;  %v2674_v40 = vcombine.high %v1264_v35, %v1268_v36 }
  0x97   :  { %2897 = vmatpush3.bf16.msra.mxu1 %v3125_v39  ;;  %v2672_v39 = vcombine.high %v1263_v33, %v1267_v34 }
  0x98   :  { %2898 = vmatprep.subr.bf16.mxu1 %v3128_v42  ;;  %v1259_v42 = vld [vmem:[#allocation7 + $0xa0] sm:$0xff] }
  0x99   :  { %2877 = vmatpush3.bf16.msra.mxu0 %v3127_v41  ;;  %v1255_v41 = vld [vmem:[#allocation7 + $0x80] sm:$0xff] }
  0x9a   :  { %2878 = vmatprep.subr.bf16.mxu0 %v3130_v44  ;;  %v1260_v44 = vld [vmem:[#allocation7 + $0xa8] sm:$0xff]  ;;  %v2664_v47 = vcombine.high %v1255_v41, %v1259_v42 }
  0x9b   :  { %2899 = vmatpush3.bf16.msra.mxu1 %v3129_v43  ;;  %v1256_v43 = vld [vmem:[#allocation7 + $0x88] sm:$0xff] }
  0x9c   :  { %2900 = vmatprep.subr.bf16.mxu1 %v3132_v46  ;;  %v2673_v46 = vcombine.low %v1264_v35, %v1268_v36  ;;  %v2666_v48 = vcombine.high %v1256_v43, %v1260_v44  ;;  %v2665_v54 = vcombine.low %v1256_v43, %v1260_v44 }
  0x9d   :  { %2879 = vmatpush3.bf16.msra.mxu0 %v3131_v45  ;;  %v2671_v45 = vcombine.low %v1263_v33, %v1267_v34 }
  0x9e   :  { %3005 = vmatprep.subr.bf16.mxu0 %v3343_v51 }
  0x9f   :  { %2901 = vmatpush3.bf16.msra.mxu1 %v3133_v49  ;;  %v1247_v49 = vld [vmem:[#allocation7 + $0x40] sm:$0xff] }
  0xa0   :  { %1150 = vmatmul.mubr.bf16.vlgmr.msra.gmra.mxu0 %v113_v53  ;;  %1665 = vmatprep.subr.bf16.mxu1 %v2704_v6  ;;  %v2663_v53 = vcombine.low %v1255_v41, %v1259_v42  ;;  %v2708_v6 = vcombine.high %v3408_v3, %v3410_v4 }
  0xa1   :  { %3006 = vmatpush3.bf16.msra.mxu0 %v3134_v55  ;;  %3021 = vmatprep.mubr.msk.bf16.mxu0 %vm3344_vm0, %v3343_v51  ;;  %v2656_v55 = vcombine.high %v1247_v49, %v1251_v50 }
  0xa2   :  { %1190 = vmatmul.mubr.bf16.vlgmr.msra.gmra.mxu1 %v115_v57  ;;  %3007 = vmatprep.subr.bf16.mxu0 %v3343_v51  ;;  %v2655_v57 = vcombine.low %v1247_v49, %v1251_v50 }
  0xa3   :  { %1666 = vmatpush1.bf16.msra.mxu1 %v2703_v8  ;;  %v2707_v8 = vcombine.low %v3408_v3, %v3410_v4  ;;  %1697 = vmatprep.mubr.bf16.mxu1 %v3345_v11 }
  0xa4   :  { %1667 = vmatprep.subr.bf16.mxu1 %v2696_v15 }
  0xa5   :  { %3008 = vmatpush3.bf16.msra.mxu0 %v3135_v58 }
  0xa6   :  { %3009 = vmatprep.subr.bf16.mxu0 %v3343_v51 }
  0xa7   :  { %1668 = vmatpush1.bf16.msra.mxu1 %v2695_v14 }
  0xa8   :  { %1669 = vmatprep.subr.bf16.mxu1 %v2688_v21 }
  0xa9   :  { %3010 = vmatpush3.bf16.msra.mxu0 %v3136_v59  ;;  %v1239_v59 = vld [vmem:[#allocation7] sm:$0xff] }
  0xaa   :  { %3011 = vmatprep.subr.bf16.mxu0 %v3343_v51 }
  0xab   :  { %1670 = vmatpush1.bf16.msra.mxu1 %v2687_v29 }
  0xac   :  { %1671 = vmatprep.subr.bf16.mxu1 %v2680_v31 }
  0xad   :  { %3012 = vmatpush3.bf16.msra.mxu0 %v3137_v60  ;;  %v1243_v60 = vld [vmem:[#allocation7 + $0x20] sm:$0xff] }
  0xae   :  { %3013 = vmatprep.subr.bf16.mxu0 %v3343_v51 }
  0xaf   :  { %1672 = vmatpush1.bf16.msra.mxu1 %v2679_v37 }
  0xb0   :  { %1673 = vmatprep.subr.bf16.mxu1 %v2672_v39 }
  0xb1   :  { %3014 = vmatpush3.bf16.msra.mxu0 %v3138_v61  ;;  %v1240_v61 = vld [vmem:[#allocation7 + $0x8] sm:$0xff] }
  0xb2   :  { %3015 = vmatprep.subr.bf16.mxu0 %v3343_v51 }
  0xb3   :  { %1674 = vmatpush1.bf16.msra.mxu1 %v2671_v45 }
  0xb4   :  { %1675 = vmatprep.subr.bf16.mxu1 %v2664_v47 }
  0xb5   :  { %3016 = vmatpush3.bf16.msra.mxu0 %v3139_v62  ;;  %v2648_v62 = vcombine.high %v1239_v59, %v1243_v60 }
  0xb6   :  { %3017 = vmatprep.subr.bf16.mxu0 %v3343_v51 }
  0xb7   :  { %1676 = vmatpush1.bf16.msra.mxu1 %v2663_v53  ;;  %v1293_v53 = vld [vmem:[#allocation7 + $0x1b0] sm:$0xff] }
  0xb8   :  { %1677 = vmatprep.subr.bf16.mxu1 %v2656_v55  ;;  %v1294_v55 = vld [vmem:[#allocation7 + $0x1b8] sm:$0xff] }
  0xb9   :  { %3018 = vmatpush3.bf16.msra.mxu0 %v3140_v63  ;;  %v1244_v63 = vld [vmem:[#allocation7 + $0x28] sm:$0xff] }
  0xba   :  { %3019 = vmatprep.subr.bf16.mxu0 %v3343_v51  ;;  %v1248_v51 = vld [vmem:[#allocation7 + $0x48] sm:$0xff]  ;;  %v2649_v1 = vcombine.low %v1240_v61, %v1244_v63 }
  0xbb   :  { %v2658_v56 = vcombine.high %v1248_v51, %v1252_v52  ;;  %v2657_v58 = vcombine.low %v1248_v51, %v1252_v52  ;;  %1678 = vmatpush1.bf16.msra.mxu1 %v2655_v57  ;;  %v1289_v51 = vld [vmem:[#allocation7 + $0x190] sm:$0xff] }
  0xbc   :  { %1679 = vmatprep.subr.bf16.mxu1 %v2648_v62 }
  0xbd   :  { %3020 = vmatpush3.bf16.msra.mxu0 %v3141_v0  ;;  %v2647_v0 = vcombine.low %v1239_v59, %v1243_v60  ;;  %v2700_v59 = vcombine.high %v1289_v51, %v1293_v53 }
  0xbe   :  { %1706 = vmatprep.subr.bf16.mxu0 %v2706_v10  ;;  %v2710_v10 = vcombine.high %v3412_v5, %v3416_v7 }
  0xbf   :  { %1680 = vmatpush1.bf16.msra.mxu1 %v2647_v0  ;;  %v1282_v0 = vld [vmem:[#allocation7 + $0x158] sm:$0xff] }
  0xc0   :  { %3022 = vmatmul.mubr.bf16.vlgmr.msra.gmra.mxu0 %v117_v2  ;;  %v2650_v2 = vcombine.high %v1240_v61, %v1244_v63  ;;  %1747 = vmatprep.subr.bf16.mxu1 %v2708_v6  ;;  %v1281_v61 = vld [vmem:[#allocation7 + $0x150] sm:$0xff] }
  0xc1   :  { %1707 = vmatpush1.bf16.msra.mxu0 %v2705_v9  ;;  %v2709_v9 = vcombine.low %v3412_v5, %v3416_v7  ;;  %1738 = vmatprep.mubr.bf16.mxu0 %v3345_v11  ;;  %v1285_v63 = vld [vmem:[#allocation7 + $0x170] sm:$0xff] }
  0xc2   :  { %1708 = vmatprep.subr.bf16.mxu0 %v2698_v20  ;;  %v2691_v3 = vcombine.low %v1281_v61, %v1285_v63 }
  0xc5   :  { %1709 = vmatpush1.bf16.msra.mxu0 %v2697_v19 }
  0xc6   :  { %1710 = vmatprep.subr.bf16.mxu0 %v2690_v24 }
  0xc9   :  { %1711 = vmatpush1.bf16.msra.mxu0 %v2689_v30 }
  0xca   :  { %1712 = vmatprep.subr.bf16.mxu0 %v2682_v32 }
  0xcd   :  { %1713 = vmatpush1.bf16.msra.mxu0 %v2681_v38 }
  0xce   :  { %1714 = vmatprep.subr.bf16.mxu0 %v2674_v40 }
  0xd1   :  { %1715 = vmatpush1.bf16.msra.mxu0 %v2673_v46 }
  0xd2   :  { %1716 = vmatprep.subr.bf16.mxu0 %v2666_v48 }
  0xd5   :  { %1717 = vmatpush1.bf16.msra.mxu0 %v2665_v54  ;;  %v1290_v54 = vld [vmem:[#allocation7 + $0x198] sm:$0xff] }
  0xd6   :  { %1718 = vmatprep.subr.bf16.mxu0 %v2658_v56  ;;  %v2702_v60 = vcombine.high %v1290_v54, %v1294_v55  ;;  %v2701_v6 = vcombine.low %v1290_v54, %v1294_v55  ;;  %v3148_v54 = vld [vmem:[#allocation10 + $0x30] sm:$0xff]  }
  0xd7   :  { %v3149_v55 = vld [vmem:[#allocation10 + $0xb0] sm:$0xff]  }
  0xd9   :  { %1719 = vmatpush1.bf16.msra.mxu0 %v2657_v58 }
  0xda   :  { %1720 = vmatprep.subr.bf16.mxu0 %v2650_v2  ;;  %v2699_v2 = vcombine.low %v1289_v51, %v1293_v53  ;;  %v3145_v51 = vld [vmem:[#allocation10 + $0xb8] sm:$0xff]   ;;  %v3147_v53 = vld [vmem:[#allocation10 + $0xf0] sm:$0xff]  }
  0xdd   :  { %1721 = vmatpush1.bf16.msra.mxu0 %v2649_v1  ;;  %v1286_v1 = vld [vmem:[#allocation7 + $0x178] sm:$0xff] }
  0xde   :  { %1788 = vmatprep.subr.bf16.mxu0 %v2710_v10  ;;  %v2692_v10 = vcombine.high %v1281_v61, %v1285_v63  ;;  %v2693_v4 = vcombine.low %v1282_v0, %v1286_v1  ;;  %v3154_v61 = vld [vmem:[#allocation10 + $0x60] sm:$0xff]  }
  0xdf   :  { %v3156_v63 = vld [vmem:[#allocation10 + $0x20] sm:$0xff]  }
 0x120   :  { %v2792_v12 = vpop.f32.mrf.mxu0 }
 0x122   :  { %v2793_v14 = vpop.f32.mrf.mxu0  ;;  %v2814_v16 = vpop.f32.mrf.mxu1 }
 0x123   :  { %v2794_v15 = vadd.f32 %v2793_v14, %v2792_v12  ;;  %v2694_v12 = vcombine.high %v1282_v0, %v1286_v1  ;;  %v1277_v14 = vld [vmem:[#allocation7 + $0x130] sm:$0xff]  ;;  %v3158_v0 = vld [vmem:[#allocation10 + $0x58] sm:$0xff]  }
 0x124   :  { %v2795_v17 = vpop.f32.mrf.mxu0  ;;  %v2815_v19 = vpop.f32.mrf.mxu1  ;;  %v3159_v1 = vld [vmem:[#allocation10 + $0xd8] sm:$0xff]  }
 0x125   :  { %v992_v18 = vadd.f32 %v2794_v15, %v2542_v13  ;;  %v2816_v20 = vadd.f32 %v2815_v19, %v2814_v16  ;;  %v1273_v13 = vld [vmem:[#allocation7 + $0x110] sm:$0xff]  ;;  %v1274_v15 = vld [vmem:[#allocation7 + $0x118] sm:$0xff] }
 0x126   :  { %v2796_v21 = vpop.f32.mrf.mxu0  ;;  %v2817_v22 = vpop.f32.mrf.mxu1  ;;  %v1278_v16 = vld [vmem:[#allocation7 + $0x138] sm:$0xff]  ;;  %v2684_v5 = vcombine.high %v1273_v13, %v1277_v14  ;;  %v2683_v19 = vcombine.low %v1273_v13, %v1277_v14 }
 0x127   :  { %v1032_v23 = vadd.f32 %v2816_v20, %v992_v18  ;;  %v2686_v7 = vcombine.high %v1274_v15, %v1278_v16  ;;  %v1266_v17 = vld [vmem:[#allocation7 + $0xd8] sm:$0xff]  ;;  %v2685_v20 = vcombine.low %v1274_v15, %v1278_v16  ;;  %v1257_v22 = vld [vmem:[#allocation7 + $0x90] sm:$0xff] }
 0x128   :  { %v2818_v24 = vpop.f32.mrf.mxu1  ;;  %v1270_v18 = vld [vmem:[#allocation7 + $0xf8] sm:$0xff]  ;;  %v3166_v15 = vld [vmem:[#allocation10 + $0x48] sm:$0xff]  }
 0x129   :  { %v1258_v24 = vld [vmem:[#allocation7 + $0x98] sm:$0xff]  ;;  %v3167_v16 = vld [vmem:[#allocation10 + $0xc8] sm:$0xff]  }
 0x12a   :  { %v3164_v13 = vld [vmem:[#allocation10 + $0x10] sm:$0xff]  }
 0x12b   :  { %v3165_v14 = vld [vmem:[#allocation10 + $0x90] sm:$0xff]  }
 0x140   :  { %v2836_v25 = vpop.f32.mrf.mxu0 }
 0x142   :  { %v2837_v26 = vpop.f32.mrf.mxu0  ;;  %v2858_v27 = vpop.f32.mrf.mxu1 }
 0x143   :  { %v2838_v41 = vadd.f32 %v2837_v26, %v2836_v25  ;;  %v1262_v25 = vld [vmem:[#allocation7 + $0xb8] sm:$0xff] }
 0x144   :  { %v2839_v28 = vpop.f32.mrf.mxu0  ;;  %v2859_v29 = vpop.f32.mrf.mxu1 }
 0x145   :  { %v1072_v42 = vadd.f32 %v2838_v41, %v1032_v23  ;;  %v2860_v43 = vadd.f32 %v2859_v29, %v2858_v27  ;;  %v1261_v23 = vld [vmem:[#allocation7 + $0xb0] sm:$0xff]  ;;  %v2677_v27 = vcombine.low %v1266_v17, %v1270_v18  ;;  %v2670_v29 = vcombine.high %v1258_v24, %v1262_v25  ;;  %v1246_v41 = vld [vmem:[#allocation7 + $0x38] sm:$0xff] }
 0x146   :  { %v2840_v30 = vpop.f32.mrf.mxu0  ;;  %v2861_v31 = vpop.f32.mrf.mxu1  ;;  %v2668_v28 = vcombine.high %v1257_v22, %v1261_v23 }
 0x147   :  { %v1112_v45 = vadd.f32 %v2860_v43, %v1072_v42  ;;  %v1249_v30 = vld [vmem:[#allocation7 + $0x50] sm:$0xff] }
 0x148   :  { %v2862_v32 = vpop.f32.mrf.mxu1  ;;  %v1253_v31 = vld [vmem:[#allocation7 + $0x70] sm:$0xff] }
 0x149   :  { %v1250_v32 = vld [vmem:[#allocation7 + $0x58] sm:$0xff]  ;;  %v2659_v42 = vcombine.low %v1249_v30, %v1253_v31 }
 0x160   :  { %v2880_v33 = vpop.f32.mrf.mxu0 }
 0x162   :  { %v2902_v34 = vpop.f32.mrf.mxu1  ;;  %v2881_v35 = vpop.f32.mrf.mxu0 }
 0x163   :  { %v2882_v44 = vadd.f32 %v2881_v35, %v2880_v33  ;;  %v1254_v33 = vld [vmem:[#allocation7 + $0x78] sm:$0xff]  ;;  %v2669_v35 = vcombine.low %v1258_v24, %v1262_v25 }
 0x164   :  { %v2903_v36 = vpop.f32.mrf.mxu1  ;;  %v2883_v37 = vpop.f32.mrf.mxu0  ;;  %v2661_v43 = vcombine.low %v1250_v32, %v1254_v33 }
 0x165   :  { %v1152_v46 = vadd.f32 %v2882_v44, %v1112_v45  ;;  %v2904_v47 = vadd.f32 %v2903_v36, %v2902_v34  ;;  %v2667_v34 = vcombine.low %v1257_v22, %v1261_v23  ;;  %v2660_v36 = vcombine.high %v1249_v30, %v1253_v31  ;;  %v3447_v22 = vld [vmem:[#allocation8] sm:$0xff] }
 0x166   :  { %v2905_v38 = vpop.f32.mrf.mxu1  ;;  %v2884_v39 = vpop.f32.mrf.mxu0  ;;  %v2662_v37 = vcombine.high %v1250_v32, %v1254_v33 }
 0x167   :  { %v1192_v48 = vadd.f32 %v2904_v47, %v1152_v46  ;;  %v1241_v38 = vld [vmem:[#allocation7 + $0x10] sm:$0xff] }
 0x168   :  { %v2906_v40 = vpop.f32.mrf.mxu1  ;;  %v1245_v39 = vld [vmem:[#allocation7 + $0x30] sm:$0xff] }
 0x169   :  { %v1242_v40 = vld [vmem:[#allocation7 + $0x18] sm:$0xff]  ;;  %v2652_v44 = vcombine.high %v1241_v38, %v1245_v39  ;;  %v2651_v46 = vcombine.low %v1241_v38, %v1245_v39 }
 0x16a   :  { %v2654_v45 = vcombine.high %v1242_v40, %v1246_v41  ;;  %v2653_v47 = vcombine.low %v1242_v40, %v1246_v41 }
 0x180   :  { %v1231_v49 = vpop.f32.mrf.mxu0 }
 0x181   :  { %v1232_v50 = vadd.f32 %v1231_v49, %v1192_v48  ;;  %v3142_v48 = vld [vmem:[#allocation10 + $0x78] sm:$0xff]  }
 0x182   :  { %v3023_v52 = vpop.f32.mrf.mxu0  ;;  %v3143_v49 = vld [vmem:[#allocation10 + $0xf8] sm:$0xff]  }
 0x183   :  { %v1237_v56 = vmax.f32 %v1232_v50, 0.0  ;;  %v3144_v50 = vld [vmem:[#allocation10 + $0x38] sm:$0xff]   ;;  %v3146_v52 = vld [vmem:[#allocation10 + $0x70] sm:$0xff]  }
 0x184   :  { %v1234_v57 = vpop.f32.mrf.mxu0 }
 0x185   :  { %v3429_v58 = vpack.c.bf16 %v1237_v56, %v1237_v56  ;;  %v3150_v56 = vld [vmem:[#allocation10 + $0x68] sm:$0xff]  }
 0x186   :  { %v3024_v62 = vpop.f32.mrf.mxu0  ;;  %v3151_v57 = vld [vmem:[#allocation10 + $0xe8] sm:$0xff]  }
 0x187   :  { %1698 = vmatmul.mubr.bf16.vlgmr.msra.gmra.mxu1 %v3429_v58  ;;  %1739 = vmatmul.mubr.bf16.vlgmr.msra.gmra.mxu0 %v3429_v58  ;;  %v3155_v62 = vld [vmem:[#allocation10 + $0xe0] sm:$0xff]  }
 0x188   :  { %1748 = vmatpush1.bf16.msra.mxu1 %v2707_v8  ;;  %1789 = vmatpush1.bf16.msra.mxu0 %v2709_v9  ;;  %v1265_v8 = vld [vmem:[#allocation7 + $0xd0] sm:$0xff] }
 0x189   :  { %1749 = vmatprep.subr.bf16.mxu1 %v2700_v59  ;;  %1790 = vmatprep.subr.bf16.mxu0 %v2702_v60  ;;  %v1269_v9 = vld [vmem:[#allocation7 + $0xf0] sm:$0xff] }
 0x18a   :  { %1779 = vmatprep.mubr.bf16.mxu1 %v3345_v11  ;;  %1820 = vmatprep.mubr.bf16.mxu0 %v3345_v11  ;;  %v2676_v21 = vcombine.high %v1265_v8, %v1269_v9  ;;  %v2678_v11 = vcombine.high %v1266_v17, %v1270_v18  ;;  %v2675_v26 = vcombine.low %v1265_v8, %v1269_v9  ;;  %v3152_v59 = vld [vmem:[#allocation10 + $0x28] sm:$0xff]   ;;  %v3172_v8 = vld [vmem:[#allocation10] sm:$0xff]   ;;  %v3174_v17 = vld [vmem:[#allocation10 + $0x178] sm:$0xff]  }
 0x18b   :  { %v3153_v60 = vld [vmem:[#allocation10 + $0xa8] sm:$0xff]   ;;  %v3173_v9 = vld [vmem:[#allocation10 + $0x80] sm:$0xff]   ;;  %v3175_v18 = vld [vmem:[#allocation10 + $0x1f8] sm:$0xff]  }
 0x18c   :  { %1750 = vmatpush1.bf16.msra.mxu1 %v2699_v2  ;;  %1791 = vmatpush1.bf16.msra.mxu0 %v2701_v6  ;;  %v3160_v2 = vld [vmem:[#allocation10 + $0x18] sm:$0xff]  }
 0x18d   :  { %1751 = vmatprep.subr.bf16.mxu1 %v2692_v10  ;;  %1792 = vmatprep.subr.bf16.mxu0 %v2694_v12  ;;  %v3161_v6 = vld [vmem:[#allocation10 + $0x98] sm:$0xff]   ;;  %v3162_v10 = vld [vmem:[#allocation10 + $0x50] sm:$0xff]  }
 0x18e   :  { %v3163_v12 = vld [vmem:[#allocation10 + $0xd0] sm:$0xff]  }
 0x190   :  { %1752 = vmatpush1.bf16.msra.mxu1 %v2691_v3  ;;  %1793 = vmatpush1.bf16.msra.mxu0 %v2693_v4  ;;  %v3168_v3 = vld [vmem:[#allocation10 + $0x8] sm:$0xff]  }
 0x191   :  { %1753 = vmatprep.subr.bf16.mxu1 %v2684_v5  ;;  %1794 = vmatprep.subr.bf16.mxu0 %v2686_v7  ;;  %v3169_v4 = vld [vmem:[#allocation10 + $0x88] sm:$0xff]   ;;  %v3170_v5 = vld [vmem:[#allocation10 + $0x40] sm:$0xff]  }
 0x192   :  { %v3171_v7 = vld [vmem:[#allocation10 + $0xc0] sm:$0xff]  }
 0x194   :  { %1754 = vmatpush1.bf16.msra.mxu1 %v2683_v19  ;;  %1795 = vmatpush1.bf16.msra.mxu0 %v2685_v20  ;;  %v1305_v19 = vlaneseq }
 0x195   :  { %1755 = vmatprep.subr.bf16.mxu1 %v2676_v21  ;;  %1796 = vmatprep.subr.bf16.mxu0 %v2678_v11 }
 0x196   :  { %v3443_v20 = vshrl.u32 %v1305_v19, 7  ;;  %v3201_v19 = vld [vmem:[#allocation10 + $0x188] sm:$0xff]  }
 0x198   :  { %1756 = vmatpush1.bf16.msra.mxu1 %v2675_v26  ;;  %1797 = vmatpush1.bf16.msra.mxu0 %v2677_v27  ;;  %v1307_v21 = vsub.s32 0, %v3443_v20  ;;  %v1315_v11 = vsub.s32 2, %v3443_v20  ;;  %v1311_v23 = vsub.s32 1, %v3443_v20  ;;  %v1319_v24 = vsub.s32 3, %v3443_v20 }
 0x199   :  { %1757 = vmatprep.subr.bf16.mxu1 %v2668_v28  ;;  %1798 = vmatprep.subr.bf16.mxu0 %v2670_v29 }
 0x19a   :  { %v1308_v25 = vrot.slane %v3447_v22, %v1307_v21  ;;  %v1316_v26 = vrot.slane %v3447_v22, %v1315_v11  ;;  %v1312_v27 = vrot.slane %v3447_v22, %v1311_v23  ;;  %v1320_v28 = vrot.slane %v3447_v22, %v1319_v24  ;;  %v3203_v23 = vld [vmem:[#allocation10 + $0x1c0] sm:$0xff]  }
 0x19c   :  { %1758 = vmatpush1.bf16.msra.mxu1 %v2667_v34  ;;  %1799 = vmatpush1.bf16.msra.mxu0 %v2669_v35 }
 0x19d   :  { %1759 = vmatprep.subr.bf16.mxu1 %v2660_v36  ;;  %1800 = vmatprep.subr.bf16.mxu0 %v2662_v37 }
 0x1a0   :  { %1760 = vmatpush1.bf16.msra.mxu1 %v2659_v42  ;;  %1801 = vmatpush1.bf16.msra.mxu0 %v2661_v43 }
 0x1a1   :  { %1761 = vmatprep.subr.bf16.mxu1 %v2652_v44  ;;  %1802 = vmatprep.subr.bf16.mxu0 %v2654_v45 }
 0x1a4   :  { %1762 = vmatpush1.bf16.msra.mxu1 %v2651_v46  ;;  %1803 = vmatpush1.bf16.msra.mxu0 %v2653_v47  ;;  %v3176_v47 = vld [vmem:[#allocation10 + $0x138] sm:$0xff]  }
 0x1a5   :  { %2917 = vmatprep.subr.bf16.mxu1 %v3142_v48  ;;  %2939 = vmatprep.subr.bf16.mxu0 %v3143_v49  ;;  %v3177_v48 = vld [vmem:[#allocation10 + $0x1b8] sm:$0xff]  }
 0x1a7   :  { %1780 = vmatmul.mubr.bf16.vlgmr.msra.gmra.mxu1 %v3429_v58  ;;  %1821 = vmatmul.mubr.bf16.vlgmr.msra.gmra.mxu0 %v3429_v58  ;;  %v3157_v58 = vld [vmem:[#allocation10 + $0xa0] sm:$0xff]  }
 0x1a8   :  { %2918 = vmatpush3.bf16.msra.mxu1 %v3144_v50  ;;  %2940 = vmatpush3.bf16.msra.mxu0 %v3145_v51  ;;  %v3178_v51 = vld [vmem:[#allocation10 + $0x170] sm:$0xff]  }
 0x1a9   :  { %2919 = vmatprep.subr.bf16.mxu1 %v3146_v52  ;;  %2941 = vmatprep.subr.bf16.mxu0 %v3147_v53  ;;  %v3179_v52 = vld [vmem:[#allocation10 + $0x1f0] sm:$0xff]  }
 0x1aa   :  { %v3180_v53 = vld [vmem:[#allocation10 + $0x130] sm:$0xff]  }
 0x1ac   :  { %2920 = vmatpush3.bf16.msra.mxu1 %v3148_v54  ;;  %2942 = vmatpush3.bf16.msra.mxu0 %v3149_v55  ;;  %v3181_v54 = vld [vmem:[#allocation10 + $0x1b0] sm:$0xff]   ;;  %v3182_v55 = vld [vmem:[#allocation10 + $0x168] sm:$0xff]  }
 0x1ad   :  { %2921 = vmatprep.subr.bf16.mxu1 %v3150_v56  ;;  %2943 = vmatprep.subr.bf16.mxu0 %v3151_v57  ;;  %v3183_v56 = vld [vmem:[#allocation10 + $0x1e8] sm:$0xff]  }
 0x1ae   :  { %v3184_v57 = vld [vmem:[#allocation10 + $0x128] sm:$0xff]  }
 0x1b0   :  { %2922 = vmatpush3.bf16.msra.mxu1 %v3152_v59  ;;  %2944 = vmatpush3.bf16.msra.mxu0 %v3153_v60  ;;  %v3185_v59 = vld [vmem:[#allocation10 + $0x1a8] sm:$0xff]   ;;  %v3186_v60 = vld [vmem:[#allocation10 + $0x160] sm:$0xff]  }
 0x1b1   :  { %2923 = vmatprep.subr.bf16.mxu1 %v3154_v61  ;;  %2945 = vmatprep.subr.bf16.mxu0 %v3155_v62  ;;  %v3187_v61 = vld [vmem:[#allocation10 + $0x1e0] sm:$0xff]  }
 0x1b2   :  { %v3188_v62 = vld [vmem:[#allocation10 + $0x120] sm:$0xff]  }
 0x1b4   :  { %2924 = vmatpush3.bf16.msra.mxu1 %v3156_v63  ;;  %2946 = vmatpush3.bf16.msra.mxu0 %v3157_v58  ;;  %v3189_v63 = vld [vmem:[#allocation10 + $0x1a0] sm:$0xff]   ;;  %v3190_v58 = vld [vmem:[#allocation10 + $0x158] sm:$0xff]  }
 0x1b5   :  { %2925 = vmatprep.subr.bf16.mxu1 %v3158_v0  ;;  %2947 = vmatprep.subr.bf16.mxu0 %v3159_v1  ;;  %v3191_v0 = vld [vmem:[#allocation10 + $0x1d8] sm:$0xff]  }
 0x1b6   :  { %v3192_v1 = vld [vmem:[#allocation10 + $0x118] sm:$0xff]  }
 0x1b8   :  { %2926 = vmatpush3.bf16.msra.mxu1 %v3160_v2  ;;  %2948 = vmatpush3.bf16.msra.mxu0 %v3161_v6  ;;  %v3193_v2 = vld [vmem:[#allocation10 + $0x198] sm:$0xff]   ;;  %v3194_v6 = vld [vmem:[#allocation10 + $0x150] sm:$0xff]  }
 0x1b9   :  { %2927 = vmatprep.subr.bf16.mxu1 %v3162_v10  ;;  %2949 = vmatprep.subr.bf16.mxu0 %v3163_v12  ;;  %v3195_v10 = vld [vmem:[#allocation10 + $0x1d0] sm:$0xff]   ;;  %v1323_v12 = vsub.s32 4, %v3443_v20 }
 0x1bc   :  { %2928 = vmatpush3.bf16.msra.mxu1 %v3164_v13  ;;  %2950 = vmatpush3.bf16.msra.mxu0 %v3165_v14  ;;  %v1331_v13 = vsub.s32 6, %v3443_v20  ;;  %v3196_v14 = vld [vmem:[#allocation10 + $0x110] sm:$0xff]  }
 0x1bd   :  { %2929 = vmatprep.subr.bf16.mxu1 %v3166_v15  ;;  %2951 = vmatprep.subr.bf16.mxu0 %v3167_v16  ;;  %v3197_v15 = vld [vmem:[#allocation10 + $0x190] sm:$0xff]   ;;  %v1327_v16 = vsub.s32 5, %v3443_v20 }
 0x1c0   :  { %2930 = vmatpush3.bf16.msra.mxu1 %v3168_v3  ;;  %2952 = vmatpush3.bf16.msra.mxu0 %v3169_v4  ;;  %v1335_v3 = vsub.s32 7, %v3443_v20  ;;  %v3198_v4 = vld [vmem:[#allocation10 + $0x148] sm:$0xff]   ;;  %v3202_v20 = vld [vmem:[#allocation10 + $0x140] sm:$0xff]  }
 0x1c1   :  { %2931 = vmatprep.subr.bf16.mxu1 %v3170_v5  ;;  %2953 = vmatprep.subr.bf16.mxu0 %v3171_v7  ;;  %v3199_v5 = vld [vmem:[#allocation10 + $0x1c8] sm:$0xff]   ;;  %v1324_v7 = vrot.slane %v3447_v22, %v1323_v12 }
 0x1c4   :  { %2932 = vmatpush3.bf16.msra.mxu1 %v3172_v8  ;;  %2954 = vmatpush3.bf16.msra.mxu0 %v3173_v9  ;;  %v1332_v8 = vrot.slane %v3447_v22, %v1331_v13  ;;  %v1328_v9 = vrot.slane %v3447_v22, %v1327_v16 }
 0x1c5   :  { %2961 = vmatprep.subr.bf16.mxu1 %v3174_v17  ;;  %2983 = vmatprep.subr.bf16.mxu0 %v3175_v18  ;;  %v1336_v17 = vrot.slane %v3447_v22, %v1335_v3  ;;  %v3200_v18 = vld [vmem:[#allocation10 + $0x108] sm:$0xff]  }
 0x247   :  { %v1699_v29 = vpop.f32.mrf.mxu1  ;;  %v1740_v30 = vpop.f32.mrf.mxu0 }
 0x248   :  { %v1700_v31 = vadd.f32 %v1699_v29, %v1308_v25  ;;  %v1741_v32 = vadd.f32 %v1740_v30, %v1316_v26  ;;  %v3204_v30 = vld [vmem:[#allocation10 + $0x100] sm:$0xff]  }
 0x249   :  { %v1701_v33 = vpop.f32.mrf.mxu1  ;;  %v1742_v34 = vpop.f32.mrf.mxu0 }
 0x24a   :  { %v1702_v35 = vadd.f32 %v1701_v33, %v1312_v27  ;;  %v1743_v36 = vadd.f32 %v1742_v34, %v1320_v28  ;;  %v1829_v37 = vmax.f32 %v1700_v31, 0.0  ;;  %v1831_v38 = vmax.f32 %v1741_v32, 0.0  ;;  %v3205_v31 = vld [vmem:[#allocation10 + $0x180] sm:$0xff]  }
 0x24b   :  { %v1703_v39 = vpop.f32.mrf.mxu1  ;;  %v1744_v40 = vpop.f32.mrf.mxu0 }
 0x24c   :  { %v1830_v41 = vmax.f32 %v1702_v35, 0.0  ;;  %v1832_v42 = vmax.f32 %v1743_v36, 0.0  ;;  %v1837_v49 = vpack.c.bf16 %v1829_v37, %v1829_v37  ;;  %v1839_v50 = vpack.c.bf16 %v1831_v38, %v1831_v38 }
 0x24d   :  { %v1704_v43 = vpop.f32.mrf.mxu1  ;;  %v1745_v44 = vpop.f32.mrf.mxu0 }
 0x24e   :  { %v1838_v45 = vpack.c.bf16 %v1830_v41, %v1830_v41  ;;  %v1840_v46 = vpack.c.bf16 %v1832_v42, %v1832_v42 }
 0x250   :  { %2396 = vmatprep.mubr.bf16.mxu1 %v1838_v45  ;;  %2436 = vmatprep.mubr.bf16.mxu0 %v1840_v46 }
 0x251   :  { %2397 = vmatmul.mubr.bf16.vlgmr.msra.gmra.mxu1 %v1837_v49  ;;  %2437 = vmatmul.mubr.bf16.vlgmr.msra.gmra.mxu0 %v1839_v50 }
 0x252   :  { %2962 = vmatpush3.bf16.msra.mxu1 %v3176_v47  ;;  %2984 = vmatpush3.bf16.msra.mxu0 %v3177_v48 }
 0x253   :  { %2963 = vmatprep.subr.bf16.mxu1 %v3178_v51  ;;  %2985 = vmatprep.subr.bf16.mxu0 %v3179_v52  ;;  %v2711_v52 = vld [vmem:[%s3475_s6] ss:$0 sm:$0xff]  ;;  %s3306_s6 = scalar_lea.vmem %s2532_s29, 128 }
 0x254   :  { %p3307_p11 = scmp.ne.s32.totalorder %s2532_s29, %s3306_s6  ;;  %p3312_p13 = scmp.lt.s32.totalorder %s3306_s6, %s3306_s6 }
 0x256   :  { %2964 = vmatpush3.bf16.msra.mxu1 %v3180_v53  ;;  %2986 = vmatpush3.bf16.msra.mxu0 %v3181_v54  ;;  %p3313_p0 = por %p3312_p13, %p3311_p12 }
 0x257   :  { %2965 = vmatprep.subr.bf16.mxu1 %v3182_v55  ;;  %2987 = vmatprep.subr.bf16.mxu0 %v3183_v56 }
 0x258   :  { %p3314_p1 = pnand %p3313_p0, %p3307_p11 }
 0x25a   :  { %2966 = vmatpush3.bf16.msra.mxu1 %v3184_v57  ;;  %2988 = vmatpush3.bf16.msra.mxu0 %v3185_v59 }
 0x25b   :  { %2967 = vmatprep.subr.bf16.mxu1 %v3186_v60  ;;  %2989 = vmatprep.subr.bf16.mxu0 %v3187_v61 }
 0x25e   :  { %2968 = vmatpush3.bf16.msra.mxu1 %v3188_v62  ;;  %2990 = vmatpush3.bf16.msra.mxu0 %v3189_v63 }
 0x25f   :  { %2969 = vmatprep.subr.bf16.mxu1 %v3190_v58  ;;  %2991 = vmatprep.subr.bf16.mxu0 %v3191_v0 }
 0x262   :  { %2970 = vmatpush3.bf16.msra.mxu1 %v3192_v1  ;;  %2992 = vmatpush3.bf16.msra.mxu0 %v3193_v2 }
 0x263   :  { %2971 = vmatprep.subr.bf16.mxu1 %v3194_v6  ;;  %2993 = vmatprep.subr.bf16.mxu0 %v3195_v10 }
 0x266   :  { %2972 = vmatpush3.bf16.msra.mxu1 %v3196_v14  ;;  %2994 = vmatpush3.bf16.msra.mxu0 %v3197_v15 }
 0x267   :  { %v1781_v21 = vpop.f32.mrf.mxu1  ;;  %v1822_v11 = vpop.f32.mrf.mxu0  ;;  %2973 = vmatprep.subr.bf16.mxu1 %v3198_v4  ;;  %2995 = vmatprep.subr.bf16.mxu0 %v3199_v5 }
 0x268   :  { %v1782_v24 = vadd.f32 %v1781_v21, %v1324_v7  ;;  %v1823_v25 = vadd.f32 %v1822_v11, %v1332_v8 }
 0x269   :  { %v1783_v26 = vpop.f32.mrf.mxu1  ;;  %v1824_v27 = vpop.f32.mrf.mxu0 }
 0x26a   :  { %v1784_v28 = vadd.f32 %v1783_v26, %v1328_v9  ;;  %v1825_v29 = vadd.f32 %v1824_v27, %v1336_v17  ;;  %2974 = vmatpush3.bf16.msra.mxu1 %v3200_v18  ;;  %2996 = vmatpush3.bf16.msra.mxu0 %v3201_v19  ;;  %v1833_v32 = vmax.f32 %v1782_v24, 0.0  ;;  %v1835_v22 = vmax.f32 %v1823_v25, 0.0 }
 0x26b   :  { %v1785_v33 = vpop.f32.mrf.mxu1  ;;  %v1826_v34 = vpop.f32.mrf.mxu0  ;;  %2975 = vmatprep.subr.bf16.mxu1 %v3202_v20  ;;  %2997 = vmatprep.subr.bf16.mxu0 %v3203_v23 }
 0x26c   :  { %v1834_v35 = vmax.f32 %v1784_v28, 0.0  ;;  %v1836_v36 = vmax.f32 %v1825_v29, 0.0  ;;  %v1841_v41 = vpack.c.bf16 %v1833_v32, %v1833_v32  ;;  %v1843_v42 = vpack.c.bf16 %v1835_v22, %v1835_v22 }
 0x26d   :  { %v1786_v37 = vpop.f32.mrf.mxu1  ;;  %v1827_v38 = vpop.f32.mrf.mxu0 }
 0x26e   :  { %v1842_v39 = vpack.c.bf16 %v1834_v35, %v1834_v35  ;;  %v1844_v40 = vpack.c.bf16 %v1836_v36, %v1836_v36  ;;  %2976 = vmatpush3.bf16.msra.mxu1 %v3204_v30  ;;  %2998 = vmatpush3.bf16.msra.mxu0 %v3205_v31 }
 0x270   :  { %2476 = vmatprep.mubr.bf16.mxu1 %v1842_v39  ;;  %2516 = vmatprep.mubr.bf16.mxu0 %v1844_v40 }
 0x271   :  { %2477 = vmatmul.mubr.bf16.vlgmr.msra.gmra.mxu1 %v1841_v41  ;;  %2517 = vmatmul.mubr.bf16.vlgmr.msra.gmra.mxu0 %v1843_v42 }
 0x311   :  { %v2933_v43 = vpop.f32.mrf.mxu1  ;;  %v2955_v44 = vpop.f32.mrf.mxu0 }
 0x313   :  { %v2934_v45 = vpop.f32.mrf.mxu1  ;;  %v2956_v46 = vpop.f32.mrf.mxu0 }
 0x314   :  { %v2935_v51 = vadd.f32 %v2934_v45, %v2933_v43  ;;  %v2957_v56 = vadd.f32 %v2956_v46, %v2955_v44 }
 0x315   :  { %v2936_v47 = vpop.f32.mrf.mxu1  ;;  %v2958_v48 = vpop.f32.mrf.mxu0 }
 0x316   :  { %v2399_v53 = vadd.f32 %v2935_v51, %v2711_v52 }
 0x317   :  { %v2937_v49 = vpop.f32.mrf.mxu1  ;;  %v2959_v50 = vpop.f32.mrf.mxu0 }
 0x318   :  { %v2439_v60 = vadd.f32 %v2957_v56, %v2399_v53 }
 0x331   :  { %v2977_v54 = vpop.f32.mrf.mxu1  ;;  %v2999_v55 = vpop.f32.mrf.mxu0 }
 0x333   :  { %v2978_v57 = vpop.f32.mrf.mxu1  ;;  %v3000_v59 = vpop.f32.mrf.mxu0 }
 0x334   :  { %v2979_v61 = vadd.f32 %v2978_v57, %v2977_v54  ;;  %v3001_v0 = vadd.f32 %v3000_v59, %v2999_v55 }
 0x335   :  { %v2980_v62 = vpop.f32.mrf.mxu1  ;;  %v3002_v63 = vpop.f32.mrf.mxu0 }
 0x336   :  { %v2479_v58 = vadd.f32 %v2979_v61, %v2439_v60 }
 0x337   :  { %v2981_v1 = vpop.f32.mrf.mxu1  ;;  %v3003_v2 = vpop.f32.mrf.mxu0 }
 0x338   :  { %v2519_v6 = vadd.f32 %v3001_v0, %v2479_v58 }
 0x33a   :  { %2524 = vst [vmem:[#allocation11] sm:$0xff] %v2519_v6 }
 0x33b   :  { %3317 = shalt.err (!%p3314_p1)
}
 0x33c   :  { %2534 = dma.vmem_to_hbm [thread:$0]  %s2532_s29, 128, %s3476_s7, [#allocation4]  }
 0x33d   :  { %3332 = dma.done.wait [#allocation4], 128  }
 0x33e   :  { %3333 = vsyncadd [#allocation4], 4294967168 }
 0x33f   :  { %2538 = vsyncpa [#allocation3], 1 }
 0x340   :  { %2539 = vsyncpa [#allocation6], 1 }
 0x341   :  { %2540 = vsyncpa [#allocation9], 1 }
 0x342   :  { %2541 = vsyncpa [#allocation4], 1 }

</bundles_post_ra>
